<compile_context>
chip_gen: v5e
topology: v5e:2x2
jax: 0.10.0
libtpu: 0.0.40
codegen_flags: <defaults>
</compile_context>

<pallas_src>
import functools

import jax
import jax.numpy as jnp
import numpy as np
from jax.experimental import pallas as pl
from jax.experimental.pallas import tpu as pltpu

EPS = 1e-5


# ---------------------------------------------------------------------------
# Kernel 1: conv (on-chip tap expansion, banded weights) + partial batch stats.
# ---------------------------------------------------------------------------
def _conv_stats_kernel(x_ref, w_ref, b_ref, conv_ref, mean_ref, m2_ref, *,
                       images_per_step, rows_h, n_images_true):
    # x_ref:    (bn, H+2, (W+2)*Cin)   padded NHWC rows, lane = (W+2)*Cin
    # w_ref:    (3, (W+2)*Cin, W*Cout) banded per-kernel-row weights (resident)
    # b_ref:    (1, W*Cout)            conv bias tiled over w (f32)
    # conv_ref: (bn, H, W*Cout)        conv output tile (conv_dtype, lane dense)
    # mean_ref: (8, W*Cout)            per-step partial mean  (row 0 valid)
    # m2_ref:   (8, W*Cout)            per-step partial M2    (row 0 valid)
    i = pl.program_id(0)
    bn = images_per_step
    H = rows_h
    wc_out = conv_ref.shape[-1]

    w0 = w_ref[0]
    w1 = w_ref[1]
    w2 = w_ref[2]
    bias = b_ref[...]

    step_mean = jnp.zeros((1, wc_out), jnp.float32)
    step_m2 = jnp.zeros((1, wc_out), jnp.float32)
    n_acc = jnp.float32(0.0)

    for b in range(bn):                       # static unroll over the group
        xb = x_ref[b]                         # (H+2, (W+2)*Cin)
        # 3x3 conv == 3 banded matmuls (one per kernel row), f32 accumulation.
        acc = jnp.dot(xb[0:H, :], w0, preferred_element_type=jnp.float32)
        acc = acc + jnp.dot(xb[1:H + 1, :], w1, preferred_element_type=jnp.float32)
        acc = acc + jnp.dot(xb[2:H + 2, :], w2, preferred_element_type=jnp.float32)
        acc = acc + bias                      # (H, W*Cout) f32
        conv_ref[b] = acc.astype(conv_ref.dtype)

        # --- partial batch stats from the f32 accumulator (Chan merge) ------
        valid = (i * bn + b < n_images_true).astype(jnp.float32)  # padded image mask
        local_mean = jnp.sum(acc, axis=0, keepdims=True) * (1.0 / H)
        d = acc - local_mean
        local_m2 = jnp.sum(d * d, axis=0, keepdims=True)

        n_b = valid * H
        n_tot = n_acc + n_b
        n_tot_safe = jnp.maximum(n_tot, 1.0)
        delta = local_mean - step_mean
        step_mean = step_mean + delta * (n_b / n_tot_safe)
        step_m2 = step_m2 + local_m2 * valid + delta * delta * (n_acc * n_b / n_tot_safe)
        n_acc = n_tot

    mean_ref[...] = jnp.broadcast_to(step_mean, mean_ref.shape)
    m2_ref[...] = jnp.broadcast_to(step_m2, m2_ref.shape)


# ---------------------------------------------------------------------------
# Kernel 2: fused BN (precomputed lane-tiled scale/shift) + ReLU. Streaming.
# ---------------------------------------------------------------------------
def _bn_relu_kernel(conv_ref, scale_ref, shift_ref, o_ref):
    x = conv_ref[...].astype(jnp.float32)
    o_ref[...] = jnp.maximum(x * scale_ref[...] + shift_ref[...], 0.0).astype(o_ref.dtype)


# ---------------------------------------------------------------------------
# Wrapper
# ---------------------------------------------------------------------------
def convolutional_forward(x_nchw, w_oihw, b, gamma, beta, *,
                          compute_dtype=jnp.bfloat16,
                          conv_dtype=jnp.bfloat16,
                          target_rows_per_step=1024):
    """Conv2d(3x3, s1, p1) -> BatchNorm2d(train-mode stats) -> ReLU (NCHW)."""
    N, Cin, H, W = x_nchw.shape
    Cout = w_oihw.shape[0]
    wc_in = (W + 2) * Cin
    wc_out = W * Cout

    # Banded lane-packed weights suit the small-channel regime (weights resident
    # in VMEM).  TODO(synk): add a Cout/K-tiled matmul path for Cout >= 128.
    if 3 * wc_in * wc_out * jnp.dtype(compute_dtype).itemsize > (8 << 20):
        raise NotImplementedError("banded-weight conv path requires small W*C")

    # Whole-image groups per phase-1 step (~target_rows_per_step output rows).
    bn = max(1, min(N, -(-target_rows_per_step // H)))
    ns = -(-N // bn)
    n_pad = ns * bn

    # ---- layout glue (one fused XLA transpose+pad+cast pass) ----------------
    # TODO(synk): keep activations NHWC end-to-end in a full network so this
    # NCHW<->NHWC plumbing and the trailing transpose disappear.
    x_nhwc = jnp.transpose(x_nchw, (0, 2, 3, 1))
    x_p = jnp.pad(x_nhwc, ((0, n_pad - N), (1, 1), (1, 1), (0, 0)))
    x_slab = x_p.reshape(n_pad, H + 2, wc_in).astype(compute_dtype)

    # ---- banded weights: conv[h, w*Cout+o] = sum_kh rows_kh[h] @ W_kh -------
    wt = jnp.transpose(w_oihw, (2, 3, 1, 0)).astype(jnp.float32)   # (3,3,Cin,Cout)
    w_rows = []
    for kh in range(3):
        acc = jnp.zeros((W + 2, Cin, W, Cout), jnp.float32)
        for kw in range(3):
            sel = jnp.eye(W + 2, W, k=-kw, dtype=jnp.float32)      # [win==w+kw]
            acc = acc + jnp.einsum('iw,co->icwo', sel, wt[kh, kw])
        w_rows.append(acc.reshape(wc_in, wc_out))
    w_banded = jnp.stack(w_rows, axis=0).astype(compute_dtype)     # (3,wc_in,wc_out)
    bias_l = jnp.tile(b.astype(jnp.float32), W).reshape(1, wc_out)  # lane = w*Cout+o

    # ---- phase 1: conv + per-step partial statistics ("parallel" grid) ------
    kernel1 = functools.partial(_conv_stats_kernel, images_per_step=bn,
                                rows_h=H, n_images_true=N)
    conv_out, mean_p, m2_p = pl.pallas_call(
        kernel1,
        out_shape=(
            jax.ShapeDtypeStruct((n_pad, H, wc_out), conv_dtype),
            jax.ShapeDtypeStruct((ns * 8, wc_out), jnp.float32),
            jax.ShapeDtypeStruct((ns * 8, wc_out), jnp.float32),
        ),
        grid_spec=pltpu.PrefetchScalarGridSpec(
            num_scalar_prefetch=0,
            grid=(ns,),
            in_specs=[
                pl.BlockSpec((bn, H + 2, wc_in), lambda i: (i, 0, 0)),
                pl.BlockSpec((3, wc_in, wc_out), lambda i: (0, 0, 0)),
                pl.BlockSpec((1, wc_out), lambda i: (0, 0)),
            ],
            out_specs=(
                pl.BlockSpec((bn, H, wc_out), lambda i: (i, 0, 0)),
                pl.BlockSpec((8, wc_out), lambda i: (i, 0)),
                pl.BlockSpec((8, wc_out), lambda i: (i, 0)),
            ),
        ),
        compiler_params=pltpu.CompilerParams(
            dimension_semantics=("parallel",)),
    )(x_slab, w_banded, bias_l)

    # ---- tiny stat merges in plain JAX (stable grouped Chan combination) ----
    counts = np.minimum((np.arange(ns) + 1) * bn, N) - np.arange(ns) * bn
    cnt = jnp.asarray(counts * H, jnp.float32)[:, None]             # (ns, 1)
    mean_s = mean_p.reshape(ns, 8, wc_out)[:, 0, :]                 # (ns, wc_out)
    m2_s = m2_p.reshape(ns, 8, wc_out)[:, 0, :]
    n_col = float(N * H)
    mean_col = jnp.sum(cnt * mean_s, axis=0) / n_col                # (wc_out,)
    m2_col = jnp.sum(m2_s, axis=0) + jnp.sum(cnt * (mean_s - mean_col) ** 2, axis=0)

    mean_wc = mean_col.reshape(W, Cout)
    m2_wc = m2_col.reshape(W, Cout)
    mean_ch = jnp.mean(mean_wc, axis=0)                              # equal counts
    m2_ch = jnp.sum(m2_wc, axis=0) + n_col * jnp.sum((mean_wc - mean_ch) ** 2, axis=0)
    var_ch = m2_ch / float(N * H * W)                                # biased variance
    inv_std = jax.lax.rsqrt(var_ch + EPS)
    scale_ch = gamma.astype(jnp.float32) * inv_std
    shift_ch = beta.astype(jnp.float32) - mean_ch * scale_ch
    scale_l = jnp.tile(scale_ch, W).reshape(1, wc_out)
    shift_l = jnp.tile(shift_ch, W).reshape(1, wc_out)

    # ---- phase 2: normalize + ReLU (pure streaming, large blocks) -----------
    per_img = H * wc_out * (jnp.dtype(conv_dtype).itemsize + 4)
    bnp = bn
    for k in range(ns, 0, -1):                # grow block while it stays small
        if ns % k == 0 and bn * k * per_img * 2 <= (8 << 20):
            bnp = bn * k
            break

    y = pl.pallas_call(
        _bn_relu_kernel,
        out_shape=jax.ShapeDtypeStruct((n_pad, H, wc_out), jnp.float32),
        grid_spec=pltpu.PrefetchScalarGridSpec(
            num_scalar_prefetch=0,
            grid=(n_pad // bnp,),
            in_specs=[
                pl.BlockSpec((bnp, H, wc_out), lambda i: (i, 0, 0)),
                pl.BlockSpec((1, wc_out), lambda i: (0, 0)),
                pl.BlockSpec((1, wc_out), lambda i: (0, 0)),
            ],
            out_specs=pl.BlockSpec((bnp, H, wc_out), lambda i: (i, 0, 0)),
        ),
        compiler_params=pltpu.CompilerParams(
            dimension_semantics=("parallel",)),
    )(conv_out, scale_l, shift_l)

    y = y[:N].reshape(N, H, W, Cout)          # lane split (w, o): free reshape
    return jnp.transpose(y, (0, 3, 1, 2))     # back to NCHW


# ---------------------------------------------------------------------------
# Pure-JAX reference (NCHW conv + training-mode BN + ReLU) for validation.
# ---------------------------------------------------------------------------
def _reference(x_nchw, w_oihw, b, gamma, beta):
    conv = jax.lax.conv_general_dilated(
        x_nchw, w_oihw, window_strides=(1, 1), padding=((1, 1), (1, 1)),
        dimension_numbers=("NCHW", "OIHW", "NCHW"))
    conv = conv + b[None, :, None, None]
    mean = jnp.mean(conv, axis=(0, 2, 3), keepdims=True)
    var = jnp.mean((conv - mean) ** 2, axis=(0, 2, 3), keepdims=True)   # biased
    y = (conv - mean) * jax.lax.rsqrt(var + EPS)
    y = y * gamma[None, :, None, None] + beta[None, :, None, None]
    return jnp.maximum(y, 0.0)


if __name__ == "__main__":
    # feature_planes=4, conv_filters=8, input 2x4x16x16.
    N, Cin, H, W = 2, 4, 16, 16
    Cout = 8

    key = jax.random.PRNGKey(0)
    kx, kw, kb = jax.random.split(key, 3)

    x = jax.random.normal(kx, (N, Cin, H, W), jnp.float32)
    fan_in = Cin * 3 * 3
    bound = float(fan_in) ** -0.5
    w = jax.random.uniform(kw, (Cout, Cin, 3, 3), jnp.float32, -bound, bound)
    b = jax.random.uniform(kb, (Cout,), jnp.float32, -bound, bound)
    gamma = jnp.ones((Cout,), jnp.float32)     # BatchNorm2d default init
    beta = jnp.zeros((Cout,), jnp.float32)

    ref = jax.block_until_ready(_reference(x, w, b, gamma, beta))

    # f32 everywhere: validates the conv / stats / BN algorithm tightly.
    out_f32 = jax.block_until_ready(convolutional_forward(
        x, w, b, gamma, beta, compute_dtype=jnp.float32, conv_dtype=jnp.float32))
    assert out_f32.shape == (N, Cout, H, W), out_f32.shape
    assert jnp.allclose(out_f32, ref, atol=1e-4, rtol=1e-4), \
        float(jnp.max(jnp.abs(out_f32 - ref)))

    # Default path: bf16 matmul operands + bf16 conv intermediate (f32 stats/BN).
    out = jax.block_until_ready(convolutional_forward(x, w, b, gamma, beta))
    assert out.shape == (N, Cout, H, W), out.shape
    assert jnp.allclose(out, ref, atol=5e-2, rtol=5e-2), \
        float(jnp.max(jnp.abs(out - ref)))

    # Odd batch: exercises padded-image masking and the multi-step stat merge.
    x3 = jax.random.normal(jax.random.PRNGKey(1), (3, Cin, H, W), jnp.float32)
    ref3 = jax.block_until_ready(_reference(x3, w, b, gamma, beta))
    out3 = jax.block_until_ready(convolutional_forward(
        x3, w, b, gamma, beta, compute_dtype=jnp.float32, conv_dtype=jnp.float32,
        target_rows_per_step=32))
    assert jnp.allclose(out3, ref3, atol=1e-4, rtol=1e-4), \
        float(jnp.max(jnp.abs(out3 - ref3)))

    print("KERNEL_OK")
</pallas_src>

<mosaic_0001>
module attributes {stable_mosaic.version = 11 : i64} {
  func.func @_conv_stats_kernel(%arg0: i32, %arg1: memref<2x18x72xf32, #tpu.memory_space<vmem>>, %arg2: memref<3x72x128xf32, #tpu.memory_space<vmem>>, %arg3: memref<1x128xf32, #tpu.memory_space<vmem>>, %arg4: memref<2x16x128xf32, #tpu.memory_space<vmem>>, %arg5: memref<8x128xf32, #tpu.memory_space<vmem>>, %arg6: memref<8x128xf32, #tpu.memory_space<vmem>>) attributes {dimension_semantics = [#tpu.dimension_semantics<parallel>], iteration_bounds = array<i64: 1>, scalar_prefetch = 0 : i64, scratch_operands = 0 : i64, tpu.core_type = #tpu.core_type<tc>, window_params = [{transform_indices = @transform_0, window_bounds = array<i64: 2, 18, 72>}, {pipeline_mode = #tpu.pipeline_mode<synchronous>, transform_indices = @transform_1, window_bounds = array<i64: 3, 72, 128>}, {pipeline_mode = #tpu.pipeline_mode<synchronous>, transform_indices = @transform_2, window_bounds = array<i64: 1, 128>}, {transform_indices = @transform_3, window_bounds = array<i64: 2, 16, 128>}, {transform_indices = @transform_4, window_bounds = array<i64: 8, 128>}, {transform_indices = @transform_5, window_bounds = array<i64: 8, 128>}]} {
    %c0 = arith.constant 0 : index
    %c0_0 = arith.constant 0 : index
    %c0_1 = arith.constant 0 : index
    %0 = vector.load %arg2[%c0, %c0_0, %c0_1] : memref<3x72x128xf32, #tpu.memory_space<vmem>>, vector<1x72x128xf32>
    %1 = vector.shape_cast %0 : vector<1x72x128xf32> to vector<72x128xf32>
    %c1 = arith.constant 1 : index
    %c0_2 = arith.constant 0 : index
    %c0_3 = arith.constant 0 : index
    %2 = vector.load %arg2[%c1, %c0_2, %c0_3] : memref<3x72x128xf32, #tpu.memory_space<vmem>>, vector<1x72x128xf32>
    %3 = vector.shape_cast %2 : vector<1x72x128xf32> to vector<72x128xf32>
    %c2 = arith.constant 2 : index
    %c0_4 = arith.constant 0 : index
    %c0_5 = arith.constant 0 : index
    %4 = vector.load %arg2[%c2, %c0_4, %c0_5] : memref<3x72x128xf32, #tpu.memory_space<vmem>>, vector<1x72x128xf32>
    %5 = vector.shape_cast %4 : vector<1x72x128xf32> to vector<72x128xf32>
    %c0_6 = arith.constant 0 : index
    %c0_7 = arith.constant 0 : index
    %6 = vector.load %arg3[%c0_6, %c0_7] : memref<1x128xf32, #tpu.memory_space<vmem>>, vector<1x128xf32>
    %cst = arith.constant 0.000000e+00 : f32
    %7 = vector.broadcast %cst : f32 to vector<1x128xf32>
    %cst_8 = arith.constant 0.000000e+00 : f32
    %8 = vector.broadcast %cst_8 : f32 to vector<1x128xf32>
    %c0_9 = arith.constant 0 : index
    %c0_10 = arith.constant 0 : index
    %c0_11 = arith.constant 0 : index
    %9 = vector.load %arg1[%c0_9, %c0_10, %c0_11] : memref<2x18x72xf32, #tpu.memory_space<vmem>>, vector<1x18x72xf32>
    %10 = vector.shape_cast %9 : vector<1x18x72xf32> to vector<18x72xf32>
    %11 = vector.extract_strided_slice %10 {offsets = [0, 0], sizes = [16, 72], strides = [1, 1]} : vector<18x72xf32> to vector<16x72xf32>
    %cst_12 = arith.constant dense<0.000000e+00> : vector<16x128xf32>
    %12 = tpu.matmul %11, %1, %cst_12 {dimension_numbers = #tpu.dot_dimension_numbers<[1], [0], [0], [1], [0, 0, 1, 1], [], []>} : vector<16x72xf32>, vector<72x128xf32>, vector<16x128xf32> -> vector<16x128xf32>
    %13 = vector.extract_strided_slice %10 {offsets = [1, 0], sizes = [16, 72], strides = [1, 1]} : vector<18x72xf32> to vector<16x72xf32>
    %cst_13 = arith.constant dense<0.000000e+00> : vector<16x128xf32>
    %14 = tpu.matmul %13, %3, %cst_13 {dimension_numbers = #tpu.dot_dimension_numbers<[1], [0], [0], [1], [0, 0, 1, 1], [], []>} : vector<16x72xf32>, vector<72x128xf32>, vector<16x128xf32> -> vector<16x128xf32>
    %15 = arith.addf %12, %14 : vector<16x128xf32>
    %16 = vector.extract_strided_slice %10 {offsets = [2, 0], sizes = [16, 72], strides = [1, 1]} : vector<18x72xf32> to vector<16x72xf32>
    %cst_14 = arith.constant dense<0.000000e+00> : vector<16x128xf32>
    %17 = tpu.matmul %16, %5, %cst_14 {dimension_numbers = #tpu.dot_dimension_numbers<[1], [0], [0], [1], [0, 0, 1, 1], [], []>} : vector<16x72xf32>, vector<72x128xf32>, vector<16x128xf32> -> vector<16x128xf32>
    %18 = arith.addf %15, %17 : vector<16x128xf32>
    %19 = vector.broadcast %6 : vector<1x128xf32> to vector<16x128xf32>
    %20 = arith.addf %18, %19 : vector<16x128xf32>
    %c0_15 = arith.constant 0 : index
    %c0_16 = arith.constant 0 : index
    %c0_17 = arith.constant 0 : index
    %21 = vector.load %arg4[%c0_15, %c0_16, %c0_17] : memref<2x16x128xf32, #tpu.memory_space<vmem>>, vector<1x16x128xf32>
    %22 = vector.shape_cast %21 : vector<1x16x128xf32> to vector<16x128xf32>
    %23 = vector.shape_cast %20 : vector<16x128xf32> to vector<1x16x128xf32>
    tpu.vector_store %arg4[%c0_15, %c0_16, %c0_17], %23 {strides = array<i32>} : memref<2x16x128xf32, #tpu.memory_space<vmem>>, vector<1x16x128xf32>,
    %c2_i32 = arith.constant 2 : i32
    %24 = arith.muli %arg0, %c2_i32 : i32
    %c0_i32 = arith.constant 0 : i32
    %25 = arith.addi %24, %c0_i32 : i32
    %c2_i32_18 = arith.constant 2 : i32
    %26 = arith.cmpi slt, %25, %c2_i32_18 : i32
    %27 = arith.extui %26 : i1 to i32
    %28 = arith.sitofp %27 : i32 to f32
    %cst_19 = arith.constant dense<0.000000e+00> : vector<128xf32>
    %29 = vector.multi_reduction <add>, %20, %cst_19 [0] : vector<16x128xf32> to vector<128xf32>
    %30 = vector.shape_cast %29 : vector<128xf32> to vector<1x128xf32>
    %cst_20 = arith.constant 6.250000e-02 : f32
    %31 = vector.broadcast %cst_20 : f32 to vector<1x128xf32>
    %32 = arith.mulf %30, %31 : vector<1x128xf32>
    %33 = vector.broadcast %32 : vector<1x128xf32> to vector<16x128xf32>
    %34 = arith.subf %20, %33 : vector<16x128xf32>
    %35 = arith.mulf %34, %34 : vector<16x128xf32>
    %cst_21 = arith.constant dense<0.000000e+00> : vector<128xf32>
    %36 = vector.multi_reduction <add>, %35, %cst_21 [0] : vector<16x128xf32> to vector<128xf32>
    %37 = vector.shape_cast %36 : vector<128xf32> to vector<1x128xf32>
    %cst_22 = arith.constant 1.600000e+01 : f32
    %38 = arith.mulf %28, %cst_22 : f32
    %cst_23 = arith.constant 0.000000e+00 : f32
    %39 = arith.addf %cst_23, %38 : f32
    %cst_24 = arith.constant 1.000000e+00 : f32
    %40 = arith.maximumf %39, %cst_24 : f32
    %41 = arith.subf %32, %7 : vector<1x128xf32>
    %42 = arith.divf %38, %40 : f32
    %43 = vector.broadcast %42 : f32 to vector<1x128xf32>
    %44 = arith.mulf %41, %43 : vector<1x128xf32>
    %45 = arith.addf %7, %44 : vector<1x128xf32>
    %46 = vector.broadcast %28 : f32 to vector<1x128xf32>
    %47 = arith.mulf %37, %46 : vector<1x128xf32>
    %48 = arith.addf %8, %47 : vector<1x128xf32>
    %49 = arith.mulf %41, %41 : vector<1x128xf32>
    %cst_25 = arith.constant 0.000000e+00 : f32
    %50 = arith.mulf %cst_25, %38 : f32
    %51 = arith.divf %50, %40 : f32
    %52 = vector.broadcast %51 : f32 to vector<1x128xf32>
    %53 = arith.mulf %49, %52 : vector<1x128xf32>
    %54 = arith.addf %48, %53 : vector<1x128xf32>
    %c1_26 = arith.constant 1 : index
    %c0_27 = arith.constant 0 : index
    %c0_28 = arith.constant 0 : index
    %55 = vector.load %arg1[%c1_26, %c0_27, %c0_28] : memref<2x18x72xf32, #tpu.memory_space<vmem>>, vector<1x18x72xf32>
    %56 = vector.shape_cast %55 : vector<1x18x72xf32> to vector<18x72xf32>
    %57 = vector.extract_strided_slice %56 {offsets = [0, 0], sizes = [16, 72], strides = [1, 1]} : vector<18x72xf32> to vector<16x72xf32>
    %cst_29 = arith.constant dense<0.000000e+00> : vector<16x128xf32>
    %58 = tpu.matmul %57, %1, %cst_29 {dimension_numbers = #tpu.dot_dimension_numbers<[1], [0], [0], [1], [0, 0, 1, 1], [], []>} : vector<16x72xf32>, vector<72x128xf32>, vector<16x128xf32> -> vector<16x128xf32>
    %59 = vector.extract_strided_slice %56 {offsets = [1, 0], sizes = [16, 72], strides = [1, 1]} : vector<18x72xf32> to vector<16x72xf32>
    %cst_30 = arith.constant dense<0.000000e+00> : vector<16x128xf32>
    %60 = tpu.matmul %59, %3, %cst_30 {dimension_numbers = #tpu.dot_dimension_numbers<[1], [0], [0], [1], [0, 0, 1, 1], [], []>} : vector<16x72xf32>, vector<72x128xf32>, vector<16x128xf32> -> vector<16x128xf32>
    %61 = arith.addf %58, %60 : vector<16x128xf32>
    %62 = vector.extract_strided_slice %56 {offsets = [2, 0], sizes = [16, 72], strides = [1, 1]} : vector<18x72xf32> to vector<16x72xf32>
    %cst_31 = arith.constant dense<0.000000e+00> : vector<16x128xf32>
    %63 = tpu.matmul %62, %5, %cst_31 {dimension_numbers = #tpu.dot_dimension_numbers<[1], [0], [0], [1], [0, 0, 1, 1], [], []>} : vector<16x72xf32>, vector<72x128xf32>, vector<16x128xf32> -> vector<16x128xf32>
    %64 = arith.addf %61, %63 : vector<16x128xf32>
    %65 = vector.broadcast %6 : vector<1x128xf32> to vector<16x128xf32>
    %66 = arith.addf %64, %65 : vector<16x128xf32>
    %c1_32 = arith.constant 1 : index
    %c0_33 = arith.constant 0 : index
    %c0_34 = arith.constant 0 : index
    %67 = vector.load %arg4[%c1_32, %c0_33, %c0_34] : memref<2x16x128xf32, #tpu.memory_space<vmem>>, vector<1x16x128xf32>
    %68 = vector.shape_cast %67 : vector<1x16x128xf32> to vector<16x128xf32>
    %69 = vector.shape_cast %66 : vector<16x128xf32> to vector<1x16x128xf32>
    tpu.vector_store %arg4[%c1_32, %c0_33, %c0_34], %69 {strides = array<i32>} : memref<2x16x128xf32, #tpu.memory_space<vmem>>, vector<1x16x128xf32>,
    %c2_i32_35 = arith.constant 2 : i32
    %70 = arith.muli %arg0, %c2_i32_35 : i32
    %c1_i32 = arith.constant 1 : i32
    %71 = arith.addi %70, %c1_i32 : i32
    %c2_i32_36 = arith.constant 2 : i32
    %72 = arith.cmpi slt, %71, %c2_i32_36 : i32
    %73 = arith.extui %72 : i1 to i32
    %74 = arith.sitofp %73 : i32 to f32
    %cst_37 = arith.constant dense<0.000000e+00> : vector<128xf32>
    %75 = vector.multi_reduction <add>, %66, %cst_37 [0] : vector<16x128xf32> to vector<128xf32>
    %76 = vector.shape_cast %75 : vector<128xf32> to vector<1x128xf32>
    %cst_38 = arith.constant 6.250000e-02 : f32
    %77 = vector.broadcast %cst_38 : f32 to vector<1x128xf32>
    %78 = arith.mulf %76, %77 : vector<1x128xf32>
    %79 = vector.broadcast %78 : vector<1x128xf32> to vector<16x128xf32>
    %80 = arith.subf %66, %79 : vector<16x128xf32>
    %81 = arith.mulf %80, %80 : vector<16x128xf32>
    %cst_39 = arith.constant dense<0.000000e+00> : vector<128xf32>
    %82 = vector.multi_reduction <add>, %81, %cst_39 [0] : vector<16x128xf32> to vector<128xf32>
    %83 = vector.shape_cast %82 : vector<128xf32> to vector<1x128xf32>
    %cst_40 = arith.constant 1.600000e+01 : f32
    %84 = arith.mulf %74, %cst_40 : f32
    %85 = arith.addf %39, %84 : f32
    %cst_41 = arith.constant 1.000000e+00 : f32
    %86 = arith.maximumf %85, %cst_41 : f32
    %87 = arith.subf %78, %45 : vector<1x128xf32>
    %88 = arith.divf %84, %86 : f32
    %89 = vector.broadcast %88 : f32 to vector<1x128xf32>
    %90 = arith.mulf %87, %89 : vector<1x128xf32>
    %91 = arith.addf %45, %90 : vector<1x128xf32>
    %92 = vector.broadcast %74 : f32 to vector<1x128xf32>
    %93 = arith.mulf %83, %92 : vector<1x128xf32>
    %94 = arith.addf %54, %93 : vector<1x128xf32>
    %95 = arith.mulf %87, %87 : vector<1x128xf32>
    %96 = arith.mulf %39, %84 : f32
    %97 = arith.divf %96, %86 : f32
    %98 = vector.broadcast %97 : f32 to vector<1x128xf32>
    %99 = arith.mulf %95, %98 : vector<1x128xf32>
    %100 = arith.addf %94, %99 : vector<1x128xf32>
    %101 = vector.shape_cast %91 : vector<1x128xf32> to vector<1x128xf32>
    %102 = vector.broadcast %101 : vector<1x128xf32> to vector<8x128xf32>
    %c0_42 = arith.constant 0 : index
    %c0_43 = arith.constant 0 : index
    %103 = vector.load %arg5[%c0_42, %c0_43] : memref<8x128xf32, #tpu.memory_space<vmem>>, vector<8x128xf32>
    tpu.vector_store %arg5[%c0_42, %c0_43], %102 {strides = array<i32>} : memref<8x128xf32, #tpu.memory_space<vmem>>, vector<8x128xf32>,
    %104 = vector.shape_cast %100 : vector<1x128xf32> to vector<1x128xf32>
    %105 = vector.broadcast %104 : vector<1x128xf32> to vector<8x128xf32>
    %c0_44 = arith.constant 0 : index
    %c0_45 = arith.constant 0 : index
    %106 = vector.load %arg6[%c0_44, %c0_45] : memref<8x128xf32, #tpu.memory_space<vmem>>, vector<8x128xf32>
    tpu.vector_store %arg6[%c0_44, %c0_45], %105 {strides = array<i32>} : memref<8x128xf32, #tpu.memory_space<vmem>>, vector<8x128xf32>,
    return
  }
  func.func @transform_0(%arg0: i32) -> (i32, i32, i32) {
    %c0_i32 = arith.constant 0 : i32
    %c0_i32_0 = arith.constant 0 : i32
    %c0_i32_1 = arith.constant 0 : i32
    return %arg0, %c0_i32, %c0_i32_0 : i32, i32, i32
  }
  func.func @transform_1(%arg0: i32) -> (i32, i32, i32) {
    %c0_i32 = arith.constant 0 : i32
    %c0_i32_0 = arith.constant 0 : i32
    %c0_i32_1 = arith.constant 0 : i32
    %c0_i32_2 = arith.constant 0 : i32
    return %c0_i32, %c0_i32_0, %c0_i32_1 : i32, i32, i32
  }
  func.func @transform_2(%arg0: i32) -> (i32, i32) {
    %c0_i32 = arith.constant 0 : i32
    %c0_i32_0 = arith.constant 0 : i32
    %c0_i32_1 = arith.constant 0 : i32
    return %c0_i32, %c0_i32_0 : i32, i32
  }
  func.func @transform_3(%arg0: i32) -> (i32, i32, i32) {
    %c0_i32 = arith.constant 0 : i32
    %c0_i32_0 = arith.constant 0 : i32
    %c0_i32_1 = arith.constant 0 : i32
    return %arg0, %c0_i32, %c0_i32_0 : i32, i32, i32
  }
  func.func @transform_4(%arg0: i32) -> (i32, i32) {
    %c0_i32 = arith.constant 0 : i32
    %c0_i32_0 = arith.constant 0 : i32
    return %arg0, %c0_i32 : i32, i32
  }
  func.func @transform_5(%arg0: i32) -> (i32, i32) {
    %c0_i32 = arith.constant 0 : i32
    %c0_i32_0 = arith.constant 0 : i32
    return %arg0, %c0_i32 : i32, i32
  }
}

</mosaic_0001>

<bundles_post_ra>
// kernel: tpu_custom_call.1
= control target key start
LH: loop header
LB: loop body
LE: loop exit
PB: predicated region body
PF: predicated region fallthrough
CT: control target
= control target key end

     0   :  { %11 = vsyncpa [#allocation3], 0  ;;  %s841_s0 = inlined_call_operand.vmem [shape: f32[2,18,72], index: 0, kind: input, shape index: {}]   ;;  %s842_s1 = inlined_call_operand.hbm [shape: f32[3,72,128], index: 1, kind: input, shape index: {}]   ;;  %s843_s2 = inlined_call_operand.vmem [shape: f32[1,128], index: 2, kind: input, shape index: {}]   ;;  %s844_s3 = inlined_call_operand.hbm [shape: f32[2,16,128], index: 3, kind: output, shape index: {0}]   ;;  %s845_s4 = inlined_call_operand.hbm [shape: f32[8,128], index: 4, kind: output, shape index: {1}]   ;;  %s846_s5 = inlined_call_operand.hbm [shape: f32[8,128], index: 5, kind: output, shape index: {2}]  }
   0x1   :  { %12 = vsyncpa [#allocation4], 0 }
   0x2   :  { %13 = vsyncpa [#allocation7], 0  ;;  %s20_s20 = sshll.u32 %s842_s1, 4  ;;  %s626_s21 = smov [#allocation2]   ;;  %s21_s20 = int_to_ptr.hbm [resolvable:$true] %s20_s20 }
   0x3   :  { %s22_s22 = sshll.u32 %s626_s21, 4  ;;  %s627_s23 = smov 128   ;;  %s23_s22 = int_to_ptr.vmem [resolvable:$true] %s22_s22 }
   0x4   :  { %s628_s24 = smov 8  }
   0x5   :  { %28 = dma.hbm_to_vmem [thread:$0]  %s21_s20, 3456, %s23_s22, [#allocation3], %s627_s23, %s627_s23, %s628_s24  }
   0x6   :  { %620 = dma.done.wait [#allocation3], 3456  }
   0x7   :  { %621 = vsyncadd [#allocation3], 4294963840  ;;  %v53_v0 = vld [vmem:[#allocation2 + $0x88] sm:$0xff]  ;;  %v670_v1 = vld [vmem:[#allocation2 + $0xd0] sm:$0xff]  ;;  %vm132_vm0 = vcmask 1045504   ;;  %vm71_vm1 = vcmask 1046528  }
   0x8   :  { %v52_v2 = vld [vmem:[#allocation2 + $0x80] sm:$0xff]  ;;  %89 = vmatpush.msra.mxu0 %v53_v0  ;;  %149 = vmatpush.msra.mxu2 %v670_v1  ;;  %v675_v4 = vld [vmem:[#allocation2 + $0xc8] sm:$0xff]  ;;  %v51_v5 = vld [vmem:[#allocation2 + $0x78] sm:$0xff]  ;;  %vm77_vm2 = vcmask 588800   ;;  %v629_v35 = vmov 16.0   ;;  %v630_v39 = vmov 32.0  }
   0x9   :  { %v673_v3 = vld [vmem:[#allocation2 + $0x40] sm:$0xff]  ;;  %268 = vmatpush.msra.mxu3 %v53_v0  ;;  %v678_v6 = vld [vmem:[#allocation2 + $0x38] sm:$0xff]  ;;  %v683_v8 = vld [vmem:[#allocation2 + $0x30] sm:$0xff]  ;;  %520 = vrcp.f32 %v629_v35  ;;  %s430_s15 = sshll.u32 %s844_s3, 4  ;;  %s632_s19 = smov [#allocation6]   ;;  %s431_s15 = int_to_ptr.hbm [resolvable:$true] %s430_s15 }
   0xa   :  { %116 = vmatpush.msra.mxu1 %v673_v3  ;;  %v680_v7 = vld [vmem:[#allocation2 + $0xc0] sm:$0xff]  ;;  %90 = vmatpush.msra.mxu0 %v52_v2  ;;  %v50_v9 = vld [vmem:[#allocation2 + $0x70] sm:$0xff]  ;;  %v686_v10 = vld [vmem:[#allocation2 + $0xb8] sm:$0xff]  ;;  %522 = vrcp.f32 %v630_v39  ;;  %s442_s20 = sshll.u32 %s632_s19, 4  ;;  %s455_s28 = sshll.u32 %s846_s5, 4  ;;  %s443_s20 = int_to_ptr.vmem [resolvable:$true] %s442_s20  ;;  %s456_s28 = int_to_ptr.hbm [resolvable:$true] %s455_s28 }
   0xb   :  { %150 = vmatpush.msra.mxu2 %v675_v4  ;;  %269 = vmatpush.msra.mxu3 %v52_v2  ;;  %v689_v11 = vld [vmem:[#allocation2 + $0x28] sm:$0xff]  ;;  %v692_v13 = vld [vmem:[#allocation2 + $0xb0] sm:$0xff]  ;;  %v695_v14 = vld [vmem:[#allocation2 + $0x20] sm:$0xff] }
   0xc   :  { %117 = vmatpush.msra.mxu1 %v678_v6  ;;  %91 = vmatpush.msra.mxu0 %v51_v5  ;;  %v49_v12 = vld [vmem:[#allocation2 + $0x68] sm:$0xff]  ;;  %v48_v15 = vld [vmem:[#allocation2 + $0x60] sm:$0xff]  ;;  %v706_v18 = vld [vmem:[#allocation2 + $0x18] sm:$0xff] }
   0xd   :  { %151 = vmatpush.msra.mxu2 %v680_v7  ;;  %270 = vmatpush.msra.mxu3 %v51_v5  ;;  %v698_v16 = vld [vmem:[#allocation2 + $0xa8] sm:$0xff]  ;;  %v703_v17 = vld [vmem:[%s841_s0] sm:$0xff]  ;;  %v47_v20 = vld [vmem:[#allocation2 + $0x58] sm:$0xff] }
   0xe   :  { %118 = vmatpush.msra.mxu1 %v683_v8  ;;  %92 = vmatpush.msra.mxu0 %v50_v9  ;;  %v711_v19 = vld [vmem:[%s841_s0 + $0x8] sm:$0xff]  ;;  %v714_v21 = vld [vmem:[#allocation2 + $0xa0] sm:$0xff]  ;;  %v717_v22 = vld [vmem:[#allocation2 + $0x10] sm:$0xff]  ;;  %v133_v23 = vrot.slane %v703_v17, 2  ;;  %v72_v27 = vrot.slane %v703_v17, 1 }
   0xf   :  { %152 = vmatpush.msra.mxu2 %v686_v10  ;;  %271 = vmatpush.msra.mxu3 %v50_v9  ;;  %v134_v24 = vrot.slane %v711_v19, 2  ;;  %v46_v25 = vld [vmem:[#allocation2 + $0x50] sm:$0xff]  ;;  %v722_v26 = vld [vmem:[#allocation2 + $0x98] sm:$0xff]  ;;  %v73_v28 = vrot.slane %v711_v19, 1  ;;  %v727_v29 = vld [vmem:[#allocation2 + $0x8] sm:$0xff]  ;;  %v521_v43 = vpop.eup %520 }
  0x10   :  { %119 = vmatpush.msra.mxu1 %v689_v11  ;;  %93 = vmatpush.msra.mxu0 %v49_v12  ;;  %v732_v30 = vld [vmem:[%s841_s0 + $0x18] sm:$0xff]  ;;  %v737_v31 = vld [vmem:[%s841_s0 + $0x20] sm:$0xff]  ;;  %v45_v32 = vld [vmem:[#allocation2 + $0x48] sm:$0xff]  ;;  %v523_v45 = vpop.eup %522  ;;  %v202_v46 = vmul.f32 16.0, %v521_v43  ;;  %vm207_vm3 = vweird.f32 %v521_v43 }
  0x11   :  { %153 = vmatpush.msra.mxu2 %v692_v13  ;;  %272 = vmatpush.msra.mxu3 %v49_v12  ;;  %v740_v33 = vld [vmem:[#allocation2 + $0x90] sm:$0xff]  ;;  %v135_v34 = vsel %vm132_vm0, %v133_v23, %v134_v24  ;;  %v74_v36 = vsel %vm71_vm1, %v72_v27, %v73_v28  ;;  %v252_v37 = vrot.slane %v732_v30, 1  ;;  %v253_v38 = vrot.slane %v737_v31, 1  ;;  %v749_v40 = vld [vmem:[#allocation2] sm:$0xff]  ;;  %v482_v48 = vld [vmem:[%s841_s0 + $0x28] sm:$0x3] }
  0x12   :  { %120 = vmatpush.msra.mxu1 %v695_v14  ;;  %94 = vmatpush.msra.mxu0 %v48_v15  ;;  %v67_v41 = vld [vmem:[%s841_s0 + $0x10] sm:$0x3]  ;;  %v379_v49 = vmul.f32 32.0, %v523_v45  ;;  %v203_v50 = vsub.f32 1.0, %v202_v46  ;;  %v255_v53 = vrot.slane %v482_v48, 1  ;;  %vm384_vm4 = vweird.f32 %v523_v45 }
  0x13   :  { %154 = vmatpush.msra.mxu2 %v698_v16  ;;  %273 = vmatpush.msra.mxu3 %v48_v15  ;;  %v254_v42 = vsel %vm71_vm1, %v252_v37, %v253_v38  ;;  %v136_v44 = vrot.slane %v67_v41, 2  ;;  %v75_v47 = vrot.slane %v67_v41, 1  ;;  %v311_v62 = vrot.slane %v732_v30, 2 }
  0x14   :  { %121 = vmatpush.msra.mxu1 %v706_v18  ;;  %95 = vmatpush.msra.mxu0 %v47_v20  ;;  %v380_v52 = vsub.f32 1.0, %v379_v49  ;;  %v204_v54 = vmul.f32 %v521_v43, %v203_v50  ;;  %v256_v59 = vsel %vm71_vm1, %v253_v38, %v255_v53  ;;  %v312_v63 = vrot.slane %v737_v31, 2 }
  0x15   :  { %155 = vmatpush.msra.mxu2 %v714_v21  ;;  %274 = vmatpush.msra.mxu3 %v47_v20  ;;  %v137_v51 = vsel %vm132_vm0, %v134_v24, %v136_v44  ;;  %v76_v55 = vsel %vm71_vm1, %v73_v28, %v75_v47  ;;  %v314_v0 = vrot.slane %v482_v48, 2 }
  0x16   :  { %122 = vmatpush.msra.mxu1 %v717_v22  ;;  %96 = vmatpush.msra.mxu0 %v46_v25  ;;  %v381_v56 = vmul.f32 %v523_v45, %v380_v52  ;;  %v205_v57 = vadd.f32 %v521_v43, %v204_v54 }
  0x17   :  { %156 = vmatpush.msra.mxu2 %v722_v26  ;;  %275 = vmatpush.msra.mxu3 %v46_v25  ;;  %v315_v2 = vsel %vm132_vm0, %v312_v63, %v314_v0 }
  0x18   :  { %123 = vmatpush.msra.mxu1 %v727_v29  ;;  %97 = vmatpush.msra.mxu0 %v45_v32  ;;  %v382_v58 = vadd.f32 %v523_v45, %v381_v56  ;;  %v209_v60 = vsel %vm207_vm3, %v521_v43, %v205_v57 }
  0x19   :  { %157 = vmatpush.msra.mxu2 %v740_v33  ;;  %474 = vmatmul.msk.f32.vlgmr.msra.gmra.mxu0 %vm77_vm2, %v74_v36  ;;  %507 = vpush %v209_v60 }
  0x1a   :  { %478 = vmatmul.msk.f32.vlgmr.msra.gmra.mxu2 %vm77_vm2, %v135_v34  ;;  %295 = vmatpush.msrb.mxu0 %v673_v3  ;;  %v386_v61 = vsel %vm384_vm4, %v523_v45, %v382_v58 }
  0x1b   :  { %489 = vmatpush.msrb.mxu2 %v673_v3  ;;  %124 = vmatpush.msra.mxu1 %v749_v40  ;;  %509 = vpush %v386_v61 }
  0x1c   :  { %276 = vmatpush.msra.mxu3 %v45_v32  ;;  %296 = vmatpush.msrb.mxu0 %v678_v6 }
  0x1d   :  { %490 = vmatpush.msrb.mxu2 %v678_v6  ;;  %327 = vmatpush.msrb.mxu1 %v670_v1 }
  0x1e   :  { %498 = vmatpush.msrb.mxu3 %v670_v1  ;;  %476 = vmatmul.msk.f32.vlgmr.msra.gmra.mxu1 %vm77_vm2, %v703_v17  ;;  %v313_v1 = vsel %vm132_vm0, %v311_v62, %v312_v63 }
  0x1f   :  { %483 = vmatmul.msk.f32.vlgmr.msra.gmra.mxu3 %vm77_vm2, %v254_v42  ;;  %297 = vmatpush.msrb.mxu0 %v683_v8 }
  0x20   :  { %491 = vmatpush.msrb.mxu2 %v683_v8  ;;  %328 = vmatpush.msrb.mxu1 %v675_v4 }
  0x21   :  { %499 = vmatpush.msrb.mxu3 %v675_v4  ;;  %298 = vmatpush.msrb.mxu0 %v689_v11 }
  0x22   :  { %492 = vmatpush.msrb.mxu2 %v689_v11  ;;  %329 = vmatpush.msrb.mxu1 %v680_v7 }
  0x23   :  { %500 = vmatpush.msrb.mxu3 %v680_v7  ;;  %479 = vmatmul.msk.f32.gmra.mxu2 %vm77_vm2, %v137_v51  ;;  %v519_v7 = vld [vmem:[%s843_s2] ss:$0 sm:$0xff]  ;;  %s631_s2 = smov [#allocation5]  }
  0x24   :  { %299 = vmatpush.msrb.mxu0 %v695_v14  ;;  %493 = vmatpush.msrb.mxu2 %v695_v14  ;;  %s428_s12 = sshll.u32 %s631_s2, 4  ;;  %s429_s12 = int_to_ptr.vmem [resolvable:$true] %s428_s12 }
  0x25   :  { %330 = vmatpush.msrb.mxu1 %v686_v10  ;;  %501 = vmatpush.msrb.mxu3 %v686_v10 }
  0x26   :  { %475 = vmatmul.msk.f32.gmra.mxu0 %vm77_vm2, %v76_v55  ;;  %494 = vmatpush.msrb.mxu2 %v706_v18 }
  0x27   :  { %300 = vmatpush.msrb.mxu0 %v706_v18  ;;  %331 = vmatpush.msrb.mxu1 %v692_v13 }
  0x28   :  { %502 = vmatpush.msrb.mxu3 %v692_v13  ;;  %477 = vmatmul.msk.f32.gmra.mxu1 %vm77_vm2, %v711_v19 }
  0x29   :  { %484 = vmatmul.msk.f32.gmra.mxu3 %vm77_vm2, %v256_v59  ;;  %301 = vmatpush.msrb.mxu0 %v717_v22 }
  0x2a   :  { %495 = vmatpush.msrb.mxu2 %v717_v22  ;;  %332 = vmatpush.msrb.mxu1 %v698_v16 }
  0x2b   :  { %503 = vmatpush.msrb.mxu3 %v698_v16  ;;  %302 = vmatpush.msrb.mxu0 %v727_v29 }
  0x2c   :  { %496 = vmatpush.msrb.mxu2 %v727_v29  ;;  %333 = vmatpush.msrb.mxu1 %v714_v21 }
  0x2d   :  { %504 = vmatpush.msrb.mxu3 %v714_v21  ;;  %303 = vmatpush.msrb.mxu0 %v749_v40 }
  0x2e   :  { %497 = vmatpush.msrb.mxu2 %v749_v40  ;;  %334 = vmatpush.msrb.mxu1 %v722_v26 }
  0x2f   :  { %505 = vmatpush.msrb.mxu3 %v722_v26  ;;  %485 = vmatmul.msk.f32.vlgmr.msrb.gmra.mxu0 %vm77_vm2, %v732_v30 }
  0x30   :  { %486 = vmatmul.msk.f32.vlgmr.msrb.gmra.mxu2 %vm77_vm2, %v737_v31  ;;  %335 = vmatpush.msrb.mxu1 %v740_v33 }
  0x31   :  { %506 = vmatpush.msrb.mxu3 %v740_v33  ;;  %487 = vmatmul.msk.f32.vlgmr.msrb.gmra.mxu1 %vm77_vm2, %v313_v1 }
  0x32   :  { %488 = vmatmul.msk.f32.vlgmr.msrb.gmra.mxu3 %vm77_vm2, %v315_v2 }
  0x4a   :  { %s827_s16 = spop %507 }
  0x4b   :  { %s216_s3 = smul.f32 16.0, %s827_s16 }
  0x4c   :  { %s830_s17 = spop %509 }
  0x4d   :  { %v217_v48 = vstv %s216_s3  ;;  %s393_s18 = smul.f32 16.0, %s830_s17 }
  0x4e   :  { %s418_s1 = smul.f32 256.0, %s830_s17 }
  0x4f   :  { %v394_v53 = vstv %s393_s18 }
  0x96   :  { %v99_v3 = vpop.f32.mrf.mxu0 }
  0x9b   :  { %v126_v4 = vpop.f32.mrf.mxu1 }
  0x9c   :  { %v127_v5 = vadd.f32 %v126_v4, %v99_v3 }
  0x9d   :  { %v159_v6 = vpop.f32.mrf.mxu2 }
  0x9e   :  { %v165_v8 = vadd.f32 %v159_v6, %v127_v5 }
  0xa0   :  { %v170_v9 = vadd.f32 %v519_v7, %v165_v8 }
  0xa2   :  { %v278_v10 = vpop.f32.mrf.mxu3  ;;  %172 = vst [vmem:[#allocation5] sm:$0xff] %v170_v9 }
  0xa3   :  { %v102_v11 = vpop.f32.mrf.mxu0 }
  0xa5   :  { %v129_v12 = vpop.f32.mrf.mxu1 }
  0xa6   :  { %v130_v13 = vadd.f32 %v129_v12, %v102_v11  ;;  %v162_v14 = vpop.f32.mrf.mxu2  ;;  %v419_v11 = vstv %s418_s1 }
  0xa8   :  { %v166_v15 = vadd.f32 %v162_v14, %v130_v13 }
  0xaa   :  { %v171_v16 = vadd.f32 %v519_v7, %v166_v15 }
  0xac   :  { %v281_v17 = vpop.f32.mrf.mxu3  ;;  %173 = vst [vmem:[#allocation5 + $0x8] sm:$0xff] %v171_v16  ;;  %v178_v18 = vadd.f32 %v171_v16, %v170_v9  ;;  %v305_v19 = vpop.f32.mrf.mxu0 }
  0xad   :  { %v306_v20 = vadd.f32 %v305_v19, %v278_v10 }
  0xae   :  { %v179_v21 = vrot.slane %v178_v18, 4  ;;  %v337_v22 = vpop.f32.mrf.mxu1 }
  0xaf   :  { %v343_v23 = vadd.f32 %v337_v22, %v306_v20 }
  0xb0   :  { %v180_v24 = vadd.f32 %v179_v21, %v178_v18 }
  0xb1   :  { %v345_v25 = vadd.f32 %v519_v7, %v343_v23 }
  0xb2   :  { %v181_v26 = vrot.slane %v180_v24, 2 }
  0xb3   :  { %v308_v27 = vpop.f32.mrf.mxu2  ;;  %348 = vst [vmem:[#allocation5 + $0x10] sm:$0xff] %v345_v25 }
  0xb4   :  { %v309_v28 = vadd.f32 %v308_v27, %v281_v17  ;;  %v182_v29 = vadd.f32 %v181_v26, %v180_v24 }
  0xb5   :  { %v340_v30 = vpop.f32.mrf.mxu3 }
  0xb6   :  { %v344_v31 = vadd.f32 %v340_v30, %v309_v28  ;;  %v183_v32 = vrot.slane %v182_v29, 1 }
  0xb8   :  { %v346_v33 = vadd.f32 %v519_v7, %v344_v31  ;;  %v184_v34 = vadd.f32 %v183_v32, %v182_v29 }
  0xba   :  { %349 = vst [vmem:[#allocation5 + $0x18] sm:$0xff] %v346_v33  ;;  %v354_v35 = vadd.f32 %v346_v33, %v345_v25  ;;  %v185_v36 = vmul.f32 0.0625, %v184_v34 }
  0xbb   :  { %436 = dma.vmem_to_hbm [thread:$0]  %s429_s12, 512, %s431_s15, [#allocation4], %s627_s23, %s627_s23, %s628_s24  }
  0xbc   :  { %v355_v37 = vrot.slane %v354_v35, 4  ;;  %v186_v38 = vsub.f32 %v170_v9, %v185_v36  ;;  %v187_v39 = vsub.f32 %v171_v16, %v185_v36  ;;  %v218_v52 = vmul.f32 %v217_v48, %v185_v36  ;;  %s444_s23 = sshll.u32 %s845_s4, 4  ;;  %s241_s24 = smul.f32 0.0, %s827_s16  ;;  %s445_s23 = int_to_ptr.hbm [resolvable:$true] %s444_s23 }
  0xbd   :  { %v223_v3 = vmul.f32 %v185_v36, %v185_v36  ;;  %s633_s4 = smov [#allocation8]  }
  0xbe   :  { %v356_v40 = vadd.f32 %v355_v37, %v354_v35  ;;  %v188_v41 = vmul.f32 %v186_v38, %v186_v38  ;;  %v189_v42 = vmul.f32 %v187_v39, %v187_v39  ;;  %v242_v5 = vstv %s241_s24  ;;  %s453_s25 = sshll.u32 %s633_s4, 4  ;;  %s454_s25 = int_to_ptr.vmem [resolvable:$true] %s453_s25 }
  0xbf   :  { %v243_v8 = vmul.f32 %v242_v5, %v223_v3 }
  0xc0   :  { %v357_v43 = vrot.slane %v356_v40, 2  ;;  %v190_v44 = vadd.f32 %v189_v42, %v188_v41 }
  0xc2   :  { %v358_v45 = vadd.f32 %v357_v43, %v356_v40  ;;  %v191_v46 = vrot.slane %v190_v44, 4 }
  0xc4   :  { %v359_v47 = vrot.slane %v358_v45, 1  ;;  %v192_v50 = vadd.f32 %v191_v46, %v190_v44 }
  0xc6   :  { %v360_v49 = vadd.f32 %v359_v47, %v358_v45  ;;  %v193_v56 = vrot.slane %v192_v50, 2 }
  0xc8   :  { %v361_v51 = vmul.f32 0.0625, %v360_v49  ;;  %v194_v62 = vadd.f32 %v193_v56, %v192_v50 }
  0xca   :  { %v362_v54 = vsub.f32 %v345_v25, %v361_v51  ;;  %v363_v55 = vsub.f32 %v346_v33, %v361_v51  ;;  %v376_v57 = vsub.f32 %v361_v51, %v218_v52  ;;  %v195_v2 = vrot.slane %v194_v62, 1 }
  0xcc   :  { %v364_v58 = vmul.f32 %v362_v54, %v362_v54  ;;  %v365_v59 = vmul.f32 %v363_v55, %v363_v55  ;;  %v395_v60 = vmul.f32 %v394_v53, %v376_v57  ;;  %v196_v6 = vadd.f32 %v195_v2, %v194_v62 }
  0xcd   :  { %v400_v10 = vmul.f32 %v376_v57, %v376_v57 }
  0xce   :  { %v366_v61 = vadd.f32 %v365_v59, %v364_v58  ;;  %v396_v63 = vadd.f32 %v395_v60, %v218_v52  ;;  %v244_v12 = vadd.f32 %v243_v8, %v196_v6 }
  0xcf   :  { %v420_v15 = vmul.f32 %v419_v11, %v400_v10 }
  0xd0   :  { %v367_v0 = vrot.slane %v366_v61, 4  ;;  %422 = vst [vmem:[#allocation6] sm:$0xff] %v396_v63 }
  0xd1   :  { %447 = dma.vmem_to_hbm [thread:$0]  %s443_s20, 128, %s445_s23, [#allocation7]  }
  0xd2   :  { %v368_v1 = vadd.f32 %v367_v0, %v366_v61 }
  0xd4   :  { %v369_v4 = vrot.slane %v368_v1, 2 }
  0xd6   :  { %v370_v7 = vadd.f32 %v369_v4, %v368_v1 }
  0xd8   :  { %v371_v9 = vrot.slane %v370_v7, 1 }
  0xda   :  { %v372_v13 = vadd.f32 %v371_v9, %v370_v7 }
  0xdc   :  { %v399_v14 = vadd.f32 %v372_v13, %v244_v12 }
  0xde   :  { %v421_v16 = vadd.f32 %v420_v15, %v399_v14 }
  0xe0   :  { %423 = vst [vmem:[#allocation8] sm:$0xff] %v421_v16 }
  0xe1   :  { %458 = dma.vmem_to_hbm [thread:$0]  %s454_s25, 128, %s456_s28, [#allocation7]  }
  0xe2   :  { %622 = dma.done.wait [#allocation4], 512  }
  0xe3   :  { %623 = vsyncadd [#allocation4], 4294966784 }
  0xe4   :  { %624 = dma.done.wait [#allocation7], 256  }
  0xe5   :  { %625 = vsyncadd [#allocation7], 4294967040 }
  0xe6   :  { %471 = vsyncpa [#allocation3], 1 }
  0xe7   :  { %472 = vsyncpa [#allocation4], 1 }
  0xe8   :  { %473 = vsyncpa [#allocation7], 1 }

</bundles_post_ra>
